<compile_context>
chip_gen: v7x
topology: tpu7x:2x2x1
jax: 0.10.0
libtpu: 0.0.40
codegen_flags: <defaults>
</compile_context>

<pallas_src>
import functools

import jax
import jax.numpy as jnp
from jax import lax
from jax.experimental import pallas as pl
from jax.experimental.pallas import tpu as pltpu

LANE = 128


def _round_up(x, m):
    return (x + m - 1) // m * m


def ef_cnn_kernel(xw_ref, wim_ref, cb_ref, w1_ref, b1_ref, w2_ref, b2_ref,
                  out_ref, pool_ref, *, valid_t, k_taps):
    """One (batch_tile, time_tile) grid step.

    xw_ref  : [Bt, Tw, D]   bf16  overlapping time window (Tw = Tt + K - 1)
    wim_ref : [KDp, Hp]     bf16  im2col conv weight (zero-padded rows/cols)
    cb_ref  : [1, Hp]       f32   conv bias
    w1_ref  : [Hp, Hhp]     bf16  fc1 weight
    b1_ref  : [1, Hhp]      f32   fc1 bias
    w2_ref  : [Hhp, OUTp]   f32   fc2 weight (column 0 is the real output)
    b2_ref  : [1, OUTp]     f32
    out_ref : [Bt, OUTp]    f32
    pool_ref: [Bt, Hp]      f32   running max over time (VMEM scratch)
    """
    t = pl.program_id(1)
    bt, tw, d = xw_ref.shape
    kdp, hp = wim_ref.shape
    tt = tw - (k_taps - 1)                      # outputs produced per time tile

    @pl.when(t == 0)
    def _init():
        # ReLU outputs are >= 0, so 0 is a safe identity for the running max.
        pool_ref[...] = jnp.zeros_like(pool_ref)

    # ---- in-kernel im2col via sublane rolls (XLU; no unaligned slices) ------
    x = xw_ref[...].astype(jnp.float32)                       # [Bt, Tw, D]
    cols = [x if k == 0 else pltpu.roll(x, shift=tw - k, axis=1)
            for k in range(k_taps)]
    pad_cols = kdp - k_taps * d
    if pad_cols:
        cols.append(jnp.zeros((bt, tw, pad_cols), jnp.float32))
    xim = jnp.concatenate(cols, axis=-1).astype(jnp.bfloat16)  # [Bt, Tw, KDp]

    # ---- conv1d as a single lane-dense matmul, f32 accumulation -------------
    z = jnp.dot(xim.reshape(bt * tw, kdp), wim_ref[...],
                preferred_element_type=jnp.float32)            # [Bt*Tw, Hp]
    conv = jnp.maximum(z.reshape(bt, tw, hp) + cb_ref[...], 0.0)

    # Halo rows (s >= Tt) and globally padded time steps are masked to 0
    # (safe because every valid ReLU activation is >= 0).
    row = lax.broadcasted_iota(jnp.int32, (bt, tw, hp), 1)
    valid = (row < tt) & ((row + t * tt) < valid_t)
    conv = jnp.where(valid, conv, 0.0)

    # ---- running max-pool over time ------------------------------------------
    pool_ref[...] = jnp.maximum(pool_ref[...], jnp.max(conv, axis=1))

    # ---- MLP head only on the last time step ---------------------------------
    @pl.when(t == pl.num_programs(1) - 1)
    def _finalize():
        pooled = pool_ref[...]
        h1 = jnp.dot(pooled.astype(jnp.bfloat16), w1_ref[...],
                     preferred_element_type=jnp.float32) + b1_ref[...]
        h1 = jnp.maximum(h1, 0.0)
        out = jnp.dot(h1, w2_ref[...],
                      preferred_element_type=jnp.float32) + b2_ref[...]
        out_ref[...] = out.astype(out_ref.dtype)


def _prepare_params(params):
    """Pad weights to lane-dense (128-multiple) shapes, build im2col conv W."""
    conv_w, conv_b, w1, b1, w2, b2 = params
    k, d, h = conv_w.shape
    hh = w1.shape[1]
    hp, hhp, outp = _round_up(h, LANE), _round_up(hh, LANE), LANE
    kdp = _round_up(k * d, LANE)

    wim = jnp.zeros((kdp, hp), jnp.float32)
    wim = wim.at[:k * d, :h].set(conv_w.reshape(k * d, h)).astype(jnp.bfloat16)
    cb = jnp.zeros((1, hp), jnp.float32).at[0, :h].set(conv_b)
    w1p = jnp.zeros((hp, hhp), jnp.float32).at[:h, :hh].set(w1).astype(jnp.bfloat16)
    b1p = jnp.zeros((1, hhp), jnp.float32).at[0, :hh].set(b1)
    w2p = jnp.zeros((hhp, outp), jnp.float32).at[:hh, :w2.shape[1]].set(w2)
    b2p = jnp.zeros((1, outp), jnp.float32).at[0, :b2.shape[0]].set(b2)
    return wim, cb, w1p, b1p, w2p, b2p


def ef_cnn_forward(text_x, audio_x, video_x, params, *,
                   batch_tile=8, time_tile=16):
    """Early fusion (concat) + tiled/pipelined Pallas conv-pool-MLP forward."""
    k = params[0].shape[0]
    wim, cb, w1p, b1p, w2p, b2p = _prepare_params(params)
    kdp, hp = wim.shape
    hhp = w1p.shape[1]
    outp = w2p.shape[1]

    # Early fusion; bf16 in HBM halves DMA traffic (accumulation stays f32).
    x = jnp.concatenate([text_x, audio_x, video_x], axis=-1).astype(jnp.bfloat16)
    b, t_len, d = x.shape

    # Tile sizes: batch tile a multiple of 8 (sublane), window Tw multiple of 8.
    bt = min(_round_up(batch_tile, 8), _round_up(b, 8))
    nb = pl.cdiv(b, bt)
    bp = nb * bt
    tw = _round_up(min(time_tile, t_len) + k - 1, 8)
    tt = tw - (k - 1)
    nt = pl.cdiv(t_len, tt)

    # 'same' left pad + right pad to nt*tt, then overlapping windows with a
    # (K-1)-row halo:  xw[b, i, s, :] = x_padded[b, i*tt + s, :].
    left = (k - 1) // 2
    right = nt * tt + (k - 1) - left - t_len
    xp = jnp.pad(x, ((0, bp - b), (left, right), (0, 0)))
    xw = jnp.stack(
        [lax.dynamic_slice_in_dim(xp, i * tt, tw, axis=1) for i in range(nt)],
        axis=1)                                               # [Bp, nT, Tw, D]

    kernel = functools.partial(ef_cnn_kernel, valid_t=t_len, k_taps=k)

    flops = 2 * bp * nt * tw * kdp * hp + 2 * bp * (hp * hhp + hhp * outp)
    bytes_accessed = (xw.size * 2                      # bf16 activations
                      + wim.size * 2 + w1p.size * 2    # bf16 weights
                      + (cb.size + b1p.size + w2p.size + b2p.size) * 4
                      + bp * outp * 4)                 # f32 output

    out = pl.pallas_call(
        kernel,
        out_shape=jax.ShapeDtypeStruct((bp, outp), jnp.float32),
        grid_spec=pltpu.PrefetchScalarGridSpec(
            num_scalar_prefetch=0,
            grid=(nb, nt),
            in_specs=[
                pl.BlockSpec((bt, None, tw, d), lambda i, j: (i, j, 0, 0)),
                pl.BlockSpec((kdp, hp), lambda i, j: (0, 0)),     # resident
                pl.BlockSpec((1, hp), lambda i, j: (0, 0)),
                pl.BlockSpec((hp, hhp), lambda i, j: (0, 0)),
                pl.BlockSpec((1, hhp), lambda i, j: (0, 0)),
                pl.BlockSpec((hhp, outp), lambda i, j: (0, 0)),
                pl.BlockSpec((1, outp), lambda i, j: (0, 0)),
            ],
            out_specs=pl.BlockSpec((bt, outp), lambda i, j: (i, 0)),
            scratch_shapes=[pltpu.VMEM((bt, hp), jnp.float32)],
        ),
        compiler_params=pltpu.CompilerParams(
            dimension_semantics=("parallel", "arbitrary"),
            vmem_limit_bytes=32 * 1024 * 1024),
        cost_estimate=pl.CostEstimate(
            flops=flops, transcendentals=0, bytes_accessed=bytes_accessed),
    )(xw, wim, cb, w1p, b1p, w2p, b2p)

    return out[:b, :1]


def ef_cnn_reference(text_x, audio_x, video_x, params):
    """Pure-JAX reference (same bf16 rounding of inputs / matmul weights)."""
    conv_w, conv_b, w1, b1, w2, b2 = params
    x = jnp.concatenate([text_x, audio_x, video_x], axis=-1)
    x = x.astype(jnp.bfloat16).astype(jnp.float32)
    cw = conv_w.astype(jnp.bfloat16).astype(jnp.float32)
    w1f = w1.astype(jnp.bfloat16).astype(jnp.float32)
    _, t_len, _ = x.shape
    k = cw.shape[0]
    pad = (k - 1) // 2
    xp = jnp.pad(x, ((0, 0), (pad, k - 1 - pad), (0, 0)))
    conv = sum(jnp.einsum("btd,dh->bth", xp[:, j:j + t_len, :], cw[j])
               for j in range(k))
    conv = jnp.maximum(conv + conv_b[None, None, :], 0.0)
    pooled = jnp.max(conv, axis=1)
    pooled = pooled.astype(jnp.bfloat16).astype(jnp.float32)
    h1 = jnp.maximum(pooled @ w1f + b1[None, :], 0.0)
    return h1 @ w2 + b2[None, :]


def init_params(key, d_in, hidden_conv, hidden_fc, kernel_size=3):
    """Deterministic synthetic parameters (module __init__ defines none)."""
    k = jax.random.split(key, 6)
    conv_w = 0.1 * jax.random.normal(k[0], (kernel_size, d_in, hidden_conv), jnp.float32)
    conv_b = 0.01 * jax.random.normal(k[1], (hidden_conv,), jnp.float32)
    w1 = 0.1 * jax.random.normal(k[2], (hidden_conv, hidden_fc), jnp.float32)
    b1 = 0.01 * jax.random.normal(k[3], (hidden_fc,), jnp.float32)
    w2 = 0.1 * jax.random.normal(k[4], (hidden_fc, 1), jnp.float32)
    b2 = 0.01 * jax.random.normal(k[5], (1,), jnp.float32)
    return conv_w, conv_b, w1, b1, w2, b2


if __name__ == "__main__":
    key = jax.random.PRNGKey(0)
    kt, ka, kv, kp = jax.random.split(key, 4)

    B, T = 12, 20                   # small demo shapes
    Dt, Da, Dv = 16, 8, 8           # text / audio / video feature dims
    H, Hh = 32, 32                  # conv channels, fc hidden

    text_x = jax.random.normal(kt, (B, T, Dt), jnp.float32)
    audio_x = jax.random.normal(ka, (B, T, Da), jnp.float32)
    video_x = jax.random.normal(kv, (B, T, Dv), jnp.float32)

    params = init_params(kp, Dt + Da + Dv, H, Hh, kernel_size=3)

    # time_tile=8 -> 2 time tiles: exercises the running-max accumulator path.
    fwd = jax.jit(functools.partial(ef_cnn_forward, batch_tile=8, time_tile=8))
    y = fwd(text_x, audio_x, video_x, params)
    jax.block_until_ready(y)

    assert y.shape == (B, 1) and y.dtype == jnp.float32

    y_ref = ef_cnn_reference(text_x, audio_x, video_x, params)
    err = float(jnp.max(jnp.abs(y - y_ref)))
    assert err < 2e-2, f"mismatch vs reference: max abs err = {err}"

    print("KERNEL_OK")
</pallas_src>

<mosaic_0001>
module attributes {stable_mosaic.version = 11 : i64} {
  func.func @ef_cnn_kernel(%arg0: i32, %arg1: i32, %arg2: memref<8x1x16x32xbf16, #tpu.memory_space<vmem>>, %arg3: memref<128x128xbf16, #tpu.memory_space<vmem>>, %arg4: memref<1x128xf32, #tpu.memory_space<vmem>>, %arg5: memref<128x128xbf16, #tpu.memory_space<vmem>>, %arg6: memref<1x128xf32, #tpu.memory_space<vmem>>, %arg7: memref<128x128xf32, #tpu.memory_space<vmem>>, %arg8: memref<1x128xf32, #tpu.memory_space<vmem>>, %arg9: memref<8x128xf32, #tpu.memory_space<vmem>>, %arg10: memref<8x128xf32, #tpu.memory_space<vmem>>) attributes {dimension_semantics = [#tpu.dimension_semantics<parallel>, #tpu.dimension_semantics<arbitrary>], iteration_bounds = array<i64: 2, 2>, scalar_prefetch = 0 : i64, scratch_operands = 1 : i64, tpu.core_type = #tpu.core_type<tc>, window_params = [{transform_indices = @transform_0, window_bounds = array<i64: 8, 1, 16, 32>}, {pipeline_mode = #tpu.pipeline_mode<synchronous>, transform_indices = @transform_1, window_bounds = array<i64: 128, 128>}, {pipeline_mode = #tpu.pipeline_mode<synchronous>, transform_indices = @transform_2, window_bounds = array<i64: 1, 128>}, {pipeline_mode = #tpu.pipeline_mode<synchronous>, transform_indices = @transform_3, window_bounds = array<i64: 128, 128>}, {pipeline_mode = #tpu.pipeline_mode<synchronous>, transform_indices = @transform_4, window_bounds = array<i64: 1, 128>}, {pipeline_mode = #tpu.pipeline_mode<synchronous>, transform_indices = @transform_5, window_bounds = array<i64: 128, 128>}, {pipeline_mode = #tpu.pipeline_mode<synchronous>, transform_indices = @transform_6, window_bounds = array<i64: 1, 128>}, {transform_indices = @transform_7, window_bounds = array<i64: 8, 128>}]} {
    %c0_i32 = arith.constant 0 : i32
    %0 = arith.cmpi eq, %arg1, %c0_i32 : i32
    %1 = arith.extui %0 : i1 to i32
    %c0_i32_0 = arith.constant 0 : i32
    %2 = arith.cmpi ne, %1, %c0_i32_0 : i32
    scf.if %2 {
      %cst_19 = arith.constant 0.000000e+00 : f32
      %39 = vector.broadcast %cst_19 : f32 to vector<8x128xf32>
      %c0_20 = arith.constant 0 : index
      %c0_21 = arith.constant 0 : index
      %40 = vector.load %arg10[%c0_20, %c0_21] : memref<8x128xf32, #tpu.memory_space<vmem>>, vector<8x128xf32>
      tpu.vector_store %arg10[%c0_20, %c0_21], %39 {strides = array<i32>} : memref<8x128xf32, #tpu.memory_space<vmem>>, vector<8x128xf32>,
    } else {
    }
    %c0 = arith.constant 0 : index
    %c0_1 = arith.constant 0 : index
    %c0_2 = arith.constant 0 : index
    %c0_3 = arith.constant 0 : index
    %3 = vector.load %arg2[%c0, %c0_1, %c0_2, %c0_3] : memref<8x1x16x32xbf16, #tpu.memory_space<vmem>>, vector<8x1x16x32xbf16>
    %4 = vector.shape_cast %3 : vector<8x1x16x32xbf16> to vector<8x16x32xbf16>
    %5 = arith.extf %4 : vector<8x16x32xbf16> to vector<8x16x32xf32>
    %c15_i32 = arith.constant 15 : i32
    %6 = tpu.dynamic_rotate %5 by %c15_i32 dim 1 : vector<8x16x32xf32>, i32 -> vector<8x16x32xf32>
    %c14_i32 = arith.constant 14 : i32
    %7 = tpu.dynamic_rotate %5 by %c14_i32 dim 1 : vector<8x16x32xf32>, i32 -> vector<8x16x32xf32>
    %cst = arith.constant 0.000000e+00 : f32
    %8 = vector.broadcast %cst : f32 to vector<8x16x32xf32>
    %9 = tpu.concatenate %5, %6, %7, %8 in 2 : vector<8x16x32xf32>, vector<8x16x32xf32>, vector<8x16x32xf32>, vector<8x16x32xf32> -> vector<8x16x128xf32>
    %10 = arith.truncf %9 : vector<8x16x128xf32> to vector<8x16x128xbf16>
    %11 = vector.shape_cast %10 : vector<8x16x128xbf16> to vector<128x128xbf16>
    %c0_4 = arith.constant 0 : index
    %c0_5 = arith.constant 0 : index
    %12 = vector.load %arg3[%c0_4, %c0_5] : memref<128x128xbf16, #tpu.memory_space<vmem>>, vector<128x128xbf16>
    %cst_6 = arith.constant dense<0.000000e+00> : vector<128x128xf32>
    %13 = tpu.matmul %11, %12, %cst_6 {dimension_numbers = #tpu.dot_dimension_numbers<[1], [0], [0], [1], [0, 0, 1, 1], [], []>} : vector<128x128xbf16>, vector<128x128xbf16>, vector<128x128xf32> -> vector<128x128xf32>
    %14 = vector.shape_cast %13 : vector<128x128xf32> to vector<8x16x128xf32>
    %c0_7 = arith.constant 0 : index
    %c0_8 = arith.constant 0 : index
    %15 = vector.load %arg4[%c0_7, %c0_8] : memref<1x128xf32, #tpu.memory_space<vmem>>, vector<1x128xf32>
    %16 = vector.shape_cast %15 : vector<1x128xf32> to vector<1x1x128xf32>
    %17 = vector.broadcast %16 : vector<1x1x128xf32> to vector<8x16x128xf32>
    %18 = arith.addf %14, %17 : vector<8x16x128xf32>
    %cst_9 = arith.constant 0.000000e+00 : f32
    %19 = vector.broadcast %cst_9 : f32 to vector<8x16x128xf32>
    %20 = arith.maximumf %18, %19 : vector<8x16x128xf32>
    %21 = tpu.iota {dimensions = array<i32: 1>} : vector<8x16x128xi32>
    %c14_i32_10 = arith.constant 14 : i32
    %22 = vector.broadcast %c14_i32_10 : i32 to vector<8x16x128xi32>
    %23 = arith.cmpi slt, %21, %22 : vector<8x16x128xi32>
    %c14_i32_11 = arith.constant 14 : i32
    %24 = arith.muli %arg1, %c14_i32_11 : i32
    %25 = vector.broadcast %24 : i32 to vector<8x16x128xi32>
    %26 = arith.addi %21, %25 : vector<8x16x128xi32>
    %c20_i32 = arith.constant 20 : i32
    %27 = vector.broadcast %c20_i32 : i32 to vector<8x16x128xi32>
    %28 = arith.cmpi slt, %26, %27 : vector<8x16x128xi32>
    %29 = arith.andi %23, %28 : vector<8x16x128xi1>
    %cst_12 = arith.constant 0.000000e+00 : f32
    %30 = vector.broadcast %cst_12 : f32 to vector<8x16x128xf32>
    %31 = arith.select %29, %20, %30 : vector<8x16x128xi1>, vector<8x16x128xf32>
    %c0_13 = arith.constant 0 : index
    %c0_14 = arith.constant 0 : index
    %32 = vector.load %arg10[%c0_13, %c0_14] : memref<8x128xf32, #tpu.memory_space<vmem>>, vector<8x128xf32>
    %cst_15 = arith.constant dense<0xFF800000> : vector<8x128xf32>
    %33 = vector.multi_reduction <maximumf>, %31, %cst_15 [1] : vector<8x16x128xf32> to vector<8x128xf32>
    %34 = arith.maximumf %32, %33 : vector<8x128xf32>
    %c0_16 = arith.constant 0 : index
    %c0_17 = arith.constant 0 : index
    %35 = vector.load %arg10[%c0_16, %c0_17] : memref<8x128xf32, #tpu.memory_space<vmem>>, vector<8x128xf32>
    tpu.vector_store %arg10[%c0_16, %c0_17], %34 {strides = array<i32>} : memref<8x128xf32, #tpu.memory_space<vmem>>, vector<8x128xf32>,
    %c1_i32 = arith.constant 1 : i32
    %36 = arith.cmpi eq, %arg1, %c1_i32 : i32
    %37 = arith.extui %36 : i1 to i32
    %c0_i32_18 = arith.constant 0 : i32
    %38 = arith.cmpi ne, %37, %c0_i32_18 : i32
    scf.if %38 {
      %c0_19 = arith.constant 0 : index
      %c0_20 = arith.constant 0 : index
      %39 = vector.load %arg10[%c0_19, %c0_20] : memref<8x128xf32, #tpu.memory_space<vmem>>, vector<8x128xf32>
      %40 = arith.truncf %39 : vector<8x128xf32> to vector<8x128xbf16>
      %c0_21 = arith.constant 0 : index
      %c0_22 = arith.constant 0 : index
      %41 = vector.load %arg5[%c0_21, %c0_22] : memref<128x128xbf16, #tpu.memory_space<vmem>>, vector<128x128xbf16>
      %cst_23 = arith.constant dense<0.000000e+00> : vector<8x128xf32>
      %42 = tpu.matmul %40, %41, %cst_23 {dimension_numbers = #tpu.dot_dimension_numbers<[1], [0], [0], [1], [0, 0, 1, 1], [], []>} : vector<8x128xbf16>, vector<128x128xbf16>, vector<8x128xf32> -> vector<8x128xf32>
      %c0_24 = arith.constant 0 : index
      %c0_25 = arith.constant 0 : index
      %43 = vector.load %arg6[%c0_24, %c0_25] : memref<1x128xf32, #tpu.memory_space<vmem>>, vector<1x128xf32>
      %44 = vector.broadcast %43 : vector<1x128xf32> to vector<8x128xf32>
      %45 = arith.addf %42, %44 : vector<8x128xf32>
      %cst_26 = arith.constant 0.000000e+00 : f32
      %46 = vector.broadcast %cst_26 : f32 to vector<8x128xf32>
      %47 = arith.maximumf %45, %46 : vector<8x128xf32>
      %c0_27 = arith.constant 0 : index
      %c0_28 = arith.constant 0 : index
      %48 = vector.load %arg7[%c0_27, %c0_28] : memref<128x128xf32, #tpu.memory_space<vmem>>, vector<128x128xf32>
      %cst_29 = arith.constant dense<0.000000e+00> : vector<8x128xf32>
      %49 = tpu.matmul %47, %48, %cst_29 {dimension_numbers = #tpu.dot_dimension_numbers<[1], [0], [0], [1], [0, 0, 1, 1], [], []>} : vector<8x128xf32>, vector<128x128xf32>, vector<8x128xf32> -> vector<8x128xf32>
      %c0_30 = arith.constant 0 : index
      %c0_31 = arith.constant 0 : index
      %50 = vector.load %arg8[%c0_30, %c0_31] : memref<1x128xf32, #tpu.memory_space<vmem>>, vector<1x128xf32>
      %51 = vector.broadcast %50 : vector<1x128xf32> to vector<8x128xf32>
      %52 = arith.addf %49, %51 : vector<8x128xf32>
      %c0_32 = arith.constant 0 : index
      %c0_33 = arith.constant 0 : index
      %53 = vector.load %arg9[%c0_32, %c0_33] : memref<8x128xf32, #tpu.memory_space<vmem>>, vector<8x128xf32>
      tpu.vector_store %arg9[%c0_32, %c0_33], %52 {strides = array<i32>} : memref<8x128xf32, #tpu.memory_space<vmem>>, vector<8x128xf32>,
    } else {
    }
    return
  }
  func.func @transform_0(%arg0: i32, %arg1: i32) -> (i32, i32, i32, i32) {
    %c0_i32 = arith.constant 0 : i32
    %c0_i32_0 = arith.constant 0 : i32
    %c0_i32_1 = arith.constant 0 : i32
    return %arg0, %arg1, %c0_i32, %c0_i32_0 : i32, i32, i32, i32
  }
  func.func @transform_1(%arg0: i32, %arg1: i32) -> (i32, i32) {
    %c0_i32 = arith.constant 0 : i32
    %c0_i32_0 = arith.constant 0 : i32
    %c0_i32_1 = arith.constant 0 : i32
    return %c0_i32, %c0_i32_0 : i32, i32
  }
  func.func @transform_2(%arg0: i32, %arg1: i32) -> (i32, i32) {
    %c0_i32 = arith.constant 0 : i32
    %c0_i32_0 = arith.constant 0 : i32
    %c0_i32_1 = arith.constant 0 : i32
    return %c0_i32, %c0_i32_0 : i32, i32
  }
  func.func @transform_3(%arg0: i32, %arg1: i32) -> (i32, i32) {
    %c0_i32 = arith.constant 0 : i32
    %c0_i32_0 = arith.constant 0 : i32
    %c0_i32_1 = arith.constant 0 : i32
    return %c0_i32, %c0_i32_0 : i32, i32
  }
  func.func @transform_4(%arg0: i32, %arg1: i32) -> (i32, i32) {
    %c0_i32 = arith.constant 0 : i32
    %c0_i32_0 = arith.constant 0 : i32
    %c0_i32_1 = arith.constant 0 : i32
    return %c0_i32, %c0_i32_0 : i32, i32
  }
  func.func @transform_5(%arg0: i32, %arg1: i32) -> (i32, i32) {
    %c0_i32 = arith.constant 0 : i32
    %c0_i32_0 = arith.constant 0 : i32
    %c0_i32_1 = arith.constant 0 : i32
    return %c0_i32, %c0_i32_0 : i32, i32
  }
  func.func @transform_6(%arg0: i32, %arg1: i32) -> (i32, i32) {
    %c0_i32 = arith.constant 0 : i32
    %c0_i32_0 = arith.constant 0 : i32
    %c0_i32_1 = arith.constant 0 : i32
    return %c0_i32, %c0_i32_0 : i32, i32
  }
  func.func @transform_7(%arg0: i32, %arg1: i32) -> (i32, i32) {
    %c0_i32 = arith.constant 0 : i32
    %c0_i32_0 = arith.constant 0 : i32
    return %arg0, %c0_i32 : i32, i32
  }
}

</mosaic_0001>

<bundles_post_ra>
// kernel: ef_cnn_forward.1
= control target key start
LH: loop header
LB: loop body
LE: loop exit
PB: predicated region body
PF: predicated region fallthrough
CT: control target
= control target key end

     0   :  { %s1812_s24 = smov 0   ;;  %s1814_s25 = smov 0   ;;  %s2297_s0 = inlined_call_operand.vmem [shape: bf16[16,2,16,32], index: 0, kind: input, shape index: {}]   ;;  %s2298_s1 = inlined_call_operand.vmem [shape: bf16[128,128], index: 1, kind: input, shape index: {}]   ;;  %s2299_s2 = inlined_call_operand.vmem [shape: f32[1,128], index: 2, kind: input, shape index: {}]   ;;  %s2300_s3 = inlined_call_operand.vmem [shape: bf16[128,128], index: 3, kind: input, shape index: {}]   ;;  %s2301_s4 = inlined_call_operand.vmem [shape: f32[1,128], index: 4, kind: input, shape index: {}]   ;;  %s2302_s5 = inlined_call_operand.vmem [shape: f32[128,128], index: 5, kind: input, shape index: {}]   ;;  %s2303_s6 = inlined_call_operand.vmem [shape: f32[1,128], index: 6, kind: input, shape index: {}]   ;;  %s2304_s7 = inlined_call_operand.vmem [shape: f32[16,128], index: 7, kind: output, shape index: {}]  }
   0x1   :  { %s1816_s26 = smov 0   ;;  %s1818_s27 = smov 0  }
   0x2   :  { %s1820_s28 = smov 0   ;;  %s1822_s29 = smov 0  }
   0x3   :  { %s1824_s30 = smov 0  }
   0x4 LB: > { %s26_s8 = sadd.s32 1, %s1756_s28  ;;  %s29_s9 = sadd.s32 1, %s1760_s29  ;;  %s1764_s30 = sphi %s1824_s30, %s17_s30   ;;  %s1760_s29 = sphi %s1822_s29, %s2314_s29   ;;  %s1756_s28 = sphi %s1820_s28, %s2313_s28   ;;  %s1752_s27 = sphi %s1818_s27, %s2312_s27   ;;  %s1748_s26 = sphi %s1816_s26, %s2311_s26   ;;  %s1744_s25 = sphi %s1814_s25, %s2310_s25   ;;  %s1740_s24 = sphi %s1812_s24, %s2309_s24  }
   0x5   : > { %p27_p0 = scmp.ge.s32.totalorder %s26_s8, 2  ;;  %p45_p1 = scmp.ne.s32.totalorder %s1744_s25, %s1740_s24 }
   0x6   : > { %p46_p2 = scmp.eq.s32.totalorder %s1764_s30, 0  ;;  %s38_s13 = sadd.s32 1, %s1744_s25 }
   0x7   : > { %s2316_s8 = smov (%p27_p0, %s26_s8), 0  ;;  %s2318_s9 = smov (!%p27_p0, %s29_s9), %s1760_s29 }
   0x8   : > { %p47_p3 = por %p46_p2, %p45_p1  ;;  %p31_p4 = scmp.ge.s32.totalorder %s2318_s9, 2 }
   0x9   : > { %s34_s10 = ssub.s32 %s1756_s28, %s2316_s8  ;;  %p1287_p6 = scmp.ge.s32.totalorder %s1764_s30, 4 }
   0xa   : > { %s2320_s9 = smov (%p31_p4, %s2318_s9), 0 }
   0xb   : > { %s33_s11 = ssub.s32 %s1760_s29, %s2320_s9  ;;  %241 = sbr.rel (%p1287_p6) target bundleno = 29 (0x1d), region = 40 }
   0xc   : > { %s35_s12 = sor.u32 %s34_s10, %s33_s11 }
   0xd   : > { %p36_p5 = scmp.eq.s32.totalorder %s35_s12, 0 }
   0xf   : > { %s1863_s14 = scalar_select %p36_p5, %s1744_s25, %s38_s13  }
  0x12   : > { %244 = sbr.rel (!%p47_p3) target bundleno = 29 (0x1d), region = 44  ;;  %s246_s15 = sand.u32 (%p47_p3), 1, %s1744_s25  }
  0x13   : > { %s1290_s16 = sshll.u32 (%p47_p3), %s1756_s28, 1  ;;  %s1288_s17 = sshll.u32 (%p47_p3), %s246_s15, 6 }
  0x14   : > { %s1343_s18 = sshll.u32 (%p47_p3), %s1760_s29, 5  ;;  %s248_s10 = scalar_lea.vmem (%p47_p3), [#allocation3], %s1288_s17 }
  0x15   : > { %s252_s19 = sadd.s32 (%p47_p3), %s1343_s18, %s1290_s16 }
  0x16   : > { %s1292_s20 = sshll.u32 (%p47_p3), %s252_s19, 2 }
  0x17   : > { %s254_s23 = scalar_lea.vmem (%p47_p3), %s2297_s0, %s1292_s20 }
  0x18   : > { %v270_v0 = vld [vmem:[%s254_s23] sm:$0xff] (%p47_p3)   ;;  %v274_v1 = vld [vmem:[%s254_s23 + $0x10] sm:$0xff] (%p47_p3)  }
  0x19   : > { %v278_v2 = vld [vmem:[%s254_s23 + $0x20] sm:$0xff]   ;;  %271 = vst [vmem:[%s248_s10] sm:$0xff] %v270_v0   ;;  %275 = vst [vmem:[%s248_s10 + $0x8] sm:$0xff] %v274_v1   ;;  %v282_v3 = vld [vmem:[%s254_s23 + $0x30] sm:$0xff]  }
  0x1a   : > { %279 = vst [vmem:[%s248_s10 + $0x10] sm:$0xff] %v278_v2   ;;  %v286_v4 = vld [vmem:[%s254_s23 + $0x40] sm:$0xff]   ;;  %v290_v5 = vld [vmem:[%s254_s23 + $0x50] sm:$0xff]   ;;  %283 = vst [vmem:[%s248_s10 + $0x18] sm:$0xff] %v282_v3  }
  0x1b   : > { %287 = vst [vmem:[%s248_s10 + $0x20] sm:$0xff] %v286_v4   ;;  %291 = vst [vmem:[%s248_s10 + $0x28] sm:$0xff] %v290_v5   ;;  %v294_v6 = vld [vmem:[%s254_s23 + $0x60] sm:$0xff]   ;;  %v298_v7 = vld [vmem:[%s254_s23 + $0x70] sm:$0xff]  }
  0x1c   : > { %295 = vst [vmem:[%s248_s10 + $0x30] sm:$0xff] %v294_v6   ;;  %299 = vst [vmem:[%s248_s10 + $0x38] sm:$0xff] %v298_v7  }
  0x1d PF: > { %p1293_p7 = scmp.ge.s32.totalorder %s1764_s30, 1  ;;  %p355_p8 = scmp.lt.s32.totalorder %s1764_s30, 5 }
  0x1f   : > { %p356_p9 = pnand %p1293_p7, %p355_p8 }
  0x20   : > { %s362_s11 = sand.u32 (!%p356_p9), 1, %s1740_s24   ;;  %p393_p10 = scmp.lt.s32.totalorder (!%p356_p9), %s1752_s27, 1 }
  0x21   : > { %359 = sbr.rel (%p356_p9) target bundleno = 894 (0x37e), region = 85  ;;  %s1294_s12 = sshll.u32 (!%p356_p9), %s362_s11, 6 }
  0x22   : > { %s1882_s18 = scalar_lea.vmem (!%p356_p9), [#allocation3], %s1294_s12  ;;  %p1296_p11 = scmp.ne.s32.totalorder (!%p356_p9), %s1748_s26, 0 }
  0x28   : > { %s2322_s27 = smov (!%p393_p10, %s1752_s27), 1  ;;  %401 = sbr.rel (%p1296_p11) target bundleno = 47 (0x2f), region = 93 }
  0x29   : > { %s1295_s13 = sshll.u32 %s2322_s27, 3  ;;  %v1766_v8 = vmov (!%p1296_p11), 0.0  }
  0x2a   : > { %s1880_s17 = scalar_lea.vmem %s2304_s7, %s1295_s13  ;;  %402 = vst [vmem:[#allocation2] sm:$0xff] (!%p1296_p11), %v1766_v8 }
  0x2f PF: > { %v1345_v9 = vld [vmem:[%s1882_s18] sm:$0xff]   ;;  %v451_v10 = vlaneseq  ;;  %v1376_v11 = vld [vmem:[%s1882_s18 + $0x8] sm:$0xff]   ;;  %v1694_v28 = vld [vmem:[%s2298_s1] sm:$0xff]   ;;  %s1767_s21 = smov 64   ;;  %s1768_s22 = smov 32   ;;  %vm631_vm2 = vcmask 261120  }
  0x30   : > { %v1380_v12 = vld [vmem:[%s1882_s18 + $0x28] sm:$0xff]   ;;  %v1888_v13 = vunpack.c.l.bf16 %v1345_v9  ;;  %v1890_v14 = vunpack.c.h.bf16 %v1345_v9  ;;  %v1892_v15 = vunpack.c.l.bf16 %v1376_v11  ;;  %v1894_v16 = vunpack.c.h.bf16 %v1376_v11  ;;  %v1379_v17 = vld [vmem:[%s1882_s18 + $0x20] sm:$0xff]   ;;  %1425 = vmatprep.subr.bf16.mxu0 %v1694_v28  ;;  %v1378_v42 = vld [vmem:[%s1882_s18 + $0x18] sm:$0xff]   ;;  %1536 = vmatprep.subr.bf16.mxu1 %v1694_v28  ;;  %p1330_p12 = scmp.ne.s32.totalorder %s1748_s26, 1 }
  0x31   : > { %v1897_v18 = vshrl.u32 %v451_v10, 7  ;;  %v1899_v19 = vunpack.c.l.bf16 %v1380_v12  ;;  %v1901_v20 = vunpack.c.h.bf16 %v1380_v12  ;;  %v1903_v21 = vunpack.c.l.bf16 %v1379_v17  ;;  %v1695_v29 = vld [vmem:[%s2298_s1 + $0x8] sm:$0xff]   ;;  %1426 = vmatpush3.bf16.msra.mxu0 %v1694_v28  ;;  %v1696_v47 = vld [vmem:[%s2298_s1 + $0x10] sm:$0xff]   ;;  %1544 = vmatpush3.bf16.msra.mxu1 %v1694_v28  ;;  %v1377_v59 = vld [vmem:[%s1882_s18 + $0x10] sm:$0xff]  }
  0x32   : > { %v470_v22 = vrot.slane %v1888_v13, 2  ;;  %v478_v23 = vrot.slane %v1890_v14, 2  ;;  %v435_v24 = vrot.slane %v1888_v13, 1  ;;  %v443_v25 = vrot.slane %v1890_v14, 1  ;;  %1427 = vmatprep.subr.bf16.mxu0 %v1695_v29  ;;  %1537 = vmatprep.subr.bf16.mxu1 %v1695_v29  ;;  %v1697_v4 = vld [vmem:[%s2298_s1 + $0x18] sm:$0xff]   ;;  %v1382_v9 = vld [vmem:[%s1882_s18 + $0x38] sm:$0xff]  }
  0x33   : > { %vm486_vm0 = vcmp.lt.s32.totalorder %v1897_v18, 6  ;;  %vm453_vm1 = vcmp.lt.s32.totalorder %v1897_v18, 7  ;;  %v471_v26 = vrot.slane %v1892_v15, 2  ;;  %v479_v27 = vrot.slane %v1894_v16, 2 }
  0x34   : > { %v487_v30 = vsel %vm486_vm0, %v470_v22, %v478_v23  ;;  %v495_v31 = vsel %vm486_vm0, %v478_v23, %v470_v22  ;;  %v454_v32 = vsel %vm453_vm1, %v435_v24, %v443_v25  ;;  %v462_v33 = vsel %vm453_vm1, %v443_v25, %v435_v24 }
  0x35   : > { %v1624_v34 = vpack.i.bf16 %v495_v31, %v487_v30  ;;  %v1614_v35 = vpack.i.bf16 %v462_v33, %v454_v32  ;;  %v488_v36 = vsel %vm486_vm0, %v471_v26, %v479_v27  ;;  %v496_v37 = vsel %vm486_vm0, %v479_v27, %v471_v26  ;;  %1428 = vmatpush3.bf16.msra.mxu0 %v1695_v29  ;;  %v1698_v30 = vld [vmem:[%s2298_s1 + $0x20] sm:$0xff]  }
  0x36   : > { %v1629_v38 = vpack.i.bf16 %v496_v37, %v488_v36  ;;  %v436_v39 = vrot.slane %v1892_v15, 1  ;;  %v444_v40 = vrot.slane %v1894_v16, 1  ;;  %v440_v41 = vrot.slane %v1899_v19, 1  ;;  %1429 = vmatprep.subr.bf16.mxu0 %v1696_v47  ;;  %1545 = vmatpush3.bf16.msra.mxu1 %v1695_v29  ;;  %v1381_v29 = vld [vmem:[%s1882_s18 + $0x30] sm:$0xff]  }
  0x37   : > { %1625 = vrot.lane.b32.xlu1 %v1624_v34, %s1767_s21  ;;  %1615 = vrot.lane.b32.xlu0 %v1614_v35, %s1768_s22  ;;  %v448_v43 = vrot.slane %v1901_v20, 1  ;;  %v1938_v44 = vunpack.c.h.bf16 %v1379_v17  ;;  %v439_v45 = vrot.slane %v1903_v21, 1  ;;  %v475_v46 = vrot.slane %v1899_v19, 2 }
  0x38   : > { %v455_v48 = vsel %vm453_vm1, %v436_v39, %v444_v40  ;;  %v463_v49 = vsel %vm453_vm1, %v444_v40, %v436_v39  ;;  %v483_v50 = vrot.slane %v1901_v20, 2  ;;  %v474_v51 = vrot.slane %v1903_v21, 2  ;;  %1538 = vmatprep.subr.bf16.mxu1 %v1696_v47 }
  0x39   : > { %v1619_v52 = vpack.i.bf16 %v463_v49, %v455_v48  ;;  %v459_v53 = vsel %vm453_vm1, %v440_v41, %v448_v43  ;;  %v467_v54 = vsel %vm453_vm1, %v448_v43, %v440_v41  ;;  %v447_v55 = vrot.slane %v1938_v44, 1  ;;  %1430 = vmatpush3.bf16.msra.mxu0 %v1696_v47 }
  0x3a   : > { %v492_v56 = vsel %vm486_vm0, %v475_v46, %v483_v50  ;;  %v500_v57 = vsel %vm486_vm0, %v483_v50, %v475_v46  ;;  %v482_v58 = vrot.slane %v1938_v44, 2  ;;  %v1639_v60 = vpack.i.bf16 %v467_v54, %v459_v53  ;;  %1431 = vmatprep.subr.bf16.mxu0 %v1697_v4  ;;  %1546 = vmatpush3.bf16.msra.mxu1 %v1696_v47 }
  0x3b   : > { %1630 = vrot.lane.b32.xlu1 %v1629_v38, %s1767_s21  ;;  %1620 = vrot.lane.b32.xlu0 %v1619_v52, %s1768_s22  ;;  %v458_v61 = vsel %vm453_vm1, %v439_v45, %v447_v55  ;;  %v466_v62 = vsel %vm453_vm1, %v447_v55, %v439_v45  ;;  %v1968_v63 = vunpack.c.l.bf16 %v1378_v42  ;;  %v1974_v3 = vunpack.c.h.bf16 %v1378_v42  ;;  %v1699_v45 = vld [vmem:[%s2298_s1 + $0x28] sm:$0xff]  }
  0x3c   : > { %v1634_v0 = vpack.i.bf16 %v466_v62, %v458_v61  ;;  %v491_v1 = vsel %vm486_vm0, %v474_v51, %v482_v58  ;;  %v499_v2 = vsel %vm486_vm0, %v482_v58, %v474_v51  ;;  %v1649_v5 = vpack.i.bf16 %v500_v57, %v492_v56  ;;  %1539 = vmatprep.subr.bf16.mxu1 %v1697_v4  ;;  %v1700_v58 = vld [vmem:[%s2298_s1 + $0x30] sm:$0xff]  }
  0x3d   : > { %v438_v6 = vrot.slane %v1968_v63, 1  ;;  %v1980_v7 = vunpack.c.l.bf16 %v1377_v59  ;;  %v1982_v8 = vunpack.c.h.bf16 %v1377_v59  ;;  %v1644_v10 = vpack.i.bf16 %v499_v2, %v491_v1  ;;  %1432 = vmatpush3.bf16.msra.mxu0 %v1697_v4  ;;  %v1701_v2 = vld [vmem:[%s2298_s1 + $0x38] sm:$0xff]  }
  0x3e   : > { %v446_v11 = vrot.slane %v1974_v3, 1  ;;  %v473_v12 = vrot.slane %v1968_v63, 2  ;;  %v481_v17 = vrot.slane %v1974_v3, 2  ;;  %v1998_v28 = vunpack.c.l.bf16 %v1382_v9  ;;  %1433 = vmatprep.subr.bf16.mxu0 %v1698_v30  ;;  %1547 = vmatpush3.bf16.msra.mxu1 %v1697_v4 }
  0x3f   : > { %1640 = vrot.lane.b32.xlu1 %v1639_v60, %s1768_s22  ;;  %1635 = vrot.lane.b32.xlu0 %v1634_v0, %s1768_s22  ;;  %v437_v22 = vrot.slane %v1980_v7, 1  ;;  %v445_v23 = vrot.slane %v1982_v8, 1  ;;  %v472_v24 = vrot.slane %v1980_v7, 2  ;;  %v480_v25 = vrot.slane %v1982_v8, 2 }
  0x40   : > { %v457_v26 = vsel %vm453_vm1, %v438_v6, %v446_v11  ;;  %v465_v27 = vsel %vm453_vm1, %v446_v11, %v438_v6  ;;  %v490_v33 = vsel %vm486_vm0, %v473_v12, %v481_v17  ;;  %v498_v36 = vsel %vm486_vm0, %v481_v17, %v473_v12  ;;  %1540 = vmatprep.subr.bf16.mxu1 %v1698_v30 }
  0x41   : > { %v456_v31 = vsel %vm453_vm1, %v437_v22, %v445_v23  ;;  %v464_v32 = vsel %vm453_vm1, %v445_v23, %v437_v22  ;;  %v1659_v34 = vpack.i.bf16 %v465_v27, %v457_v26  ;;  %v2012_v37 = vunpack.c.h.bf16 %v1382_v9  ;;  %1434 = vmatpush3.bf16.msra.mxu0 %v1698_v30 }
  0x42   : > { %v1654_v35 = vpack.i.bf16 %v464_v32, %v456_v31  ;;  %v489_v38 = vsel %vm486_vm0, %v472_v24, %v480_v25  ;;  %v497_v39 = vsel %vm486_vm0, %v480_v25, %v472_v24  ;;  %v2020_v40 = vunpack.c.l.bf16 %v1381_v29  ;;  %1435 = vmatprep.subr.bf16.mxu0 %v1699_v45  ;;  %1548 = vmatpush3.bf16.msra.mxu1 %v1698_v30 }
  0x43   : > { %1650 = vrot.lane.b32.xlu1 %v1649_v5, %s1767_s21  ;;  %1645 = vrot.lane.b32.xlu0 %v1644_v10, %s1767_s21  ;;  %v2022_v41 = vunpack.c.h.bf16 %v1381_v29  ;;  %v442_v42 = vrot.slane %v1998_v28, 1  ;;  %v450_v43 = vrot.slane %v2012_v37, 1  ;;  %v1669_v48 = vpack.i.bf16 %v498_v36, %v490_v33 }
  0x44   : > { %v441_v46 = vrot.slane %v2020_v40, 1  ;;  %v1664_v49 = vpack.i.bf16 %v497_v39, %v489_v38  ;;  %v477_v50 = vrot.slane %v1998_v28, 2  ;;  %v485_v51 = vrot.slane %v2012_v37, 2  ;;  %1541 = vmatprep.subr.bf16.mxu1 %v1699_v45 }
  0x45   : > { %v449_v47 = vrot.slane %v2022_v41, 1  ;;  %v476_v52 = vrot.slane %v2020_v40, 2  ;;  %v484_v53 = vrot.slane %v2022_v41, 2  ;;  %v461_v54 = vsel %vm453_vm1, %v442_v42, %v450_v43  ;;  %1436 = vmatpush3.bf16.msra.mxu0 %v1699_v45 }
  0x46   : > { %v469_v55 = vsel %vm453_vm1, %v450_v43, %v442_v42  ;;  %v494_v61 = vsel %vm486_vm0, %v477_v50, %v485_v51  ;;  %v502_v62 = vsel %vm486_vm0, %v485_v51, %v477_v50  ;;  %1437 = vmatprep.subr.bf16.mxu0 %v1700_v58  ;;  %1549 = vmatpush3.bf16.msra.mxu1 %v1699_v45  ;;  %vm648_vm3 = vcmask 523264  }
  0x47   : > { %1660 = vrot.lane.b32.xlu1 %v1659_v34, %s1768_s22  ;;  %1655 = vrot.lane.b32.xlu0 %v1654_v35, %s1768_s22  ;;  %v460_v56 = vsel %vm453_vm1, %v441_v46, %v449_v47  ;;  %v468_v57 = vsel %vm453_vm1, %v449_v47, %v441_v46  ;;  %v1679_v59 = vpack.i.bf16 %v469_v55, %v461_v54  ;;  %vm665_vm4 = vcmask 785408  }
  0x48   : > { %v1674_v60 = vpack.i.bf16 %v468_v57, %v460_v56  ;;  %v493_v0 = vsel %vm486_vm0, %v476_v52, %v484_v53  ;;  %v501_v1 = vsel %vm486_vm0, %v484_v53, %v476_v52  ;;  %v1689_v4 = vpack.i.bf16 %v502_v62, %v494_v61  ;;  %1542 = vmatprep.subr.bf16.mxu1 %v1700_v58  ;;  %vm2071_vm5 = vmpackc.low %vm665_vm4, %vm665_vm4 }
  0x49   : > { %1438 = vmatpush3.bf16.msra.mxu0 %v1700_v58  ;;  %v1684_v5 = vpack.i.bf16 %v501_v1, %v493_v0  ;;  %vm982_vm10 = vcmask 1041409   ;;  %vm984_vm11 = vcmask 1042434   ;;  %vm986_vm12 = vcmask 1043459  }
  0x4a   : > { %1439 = vmatprep.subr.bf16.mxu0 %v1701_v2  ;;  %1550 = vmatpush3.bf16.msra.mxu1 %v1700_v58  ;;  %vm988_vm13 = vcmask 1044484   ;;  %vm990_vm14 = vcmask 1045509   ;;  %vm992_vm15 = vcmask 1046534   ;;  %vm994_vm0 = vcmask 1047559  }
  0x4b   : > { %1670 = vrot.lane.b32.xlu1 %v1669_v48, %s1767_s21  ;;  %1665 = vrot.lane.b32.xlu0 %v1664_v49, %s1767_s21  ;;  %vm1770_vm1 = vmmov (!%p1330_p12), 0  }
  0x4c   : > { %1543 = vmatprep.subr.bf16.mxu1 %v1701_v2 }
  0x4d   : > { %1440 = vmatpush3.bf16.msra.mxu0 %v1701_v2 }
  0x4e   : > { %1551 = vmatpush3.bf16.msra.mxu1 %v1701_v2 }
  0x4f   : > { %1680 = vrot.lane.b32.xlu1 %v1679_v59, %s1768_s22  ;;  %1675 = vrot.lane.b32.xlu0 %v1674_v60, %s1768_s22 }
  0x53   : > { %1690 = vrot.lane.b32.xlu1 %v1689_v4, %s1767_s21  ;;  %1685 = vrot.lane.b32.xlu0 %v1684_v5, %s1767_s21  ;;  %s893_s21 = smul.u32 14, %s1748_s26 }
  0xa9   : > { %v1626_v6 = vpop.permute.xlu1 %1625  ;;  %v1616_v9 = vpop.permute.xlu0 %1615 }
  0xaa   : > { %v1628_v10 = vunpack.i.h.bf16 %v1626_v6  ;;  %v1627_v11 = vunpack.i.l.bf16 %v1626_v6  ;;  %v1618_v12 = vunpack.i.h.bf16 %v1616_v9  ;;  %v1617_v17 = vunpack.i.l.bf16 %v1616_v9 }
  0xac   : > { %v632_v22 = vsel %vm631_vm2, %v1888_v13, %v1617_v17  ;;  %v633_v23 = vsel %vm631_vm2, %v1890_v14, %v1618_v12 }
  0xad   : > { %v1631_v24 = vpop.permute.xlu1 %1630  ;;  %v1621_v25 = vpop.permute.xlu0 %1620  ;;  %v649_v26 = vsel %vm648_vm3, %v632_v22, %v1627_v11  ;;  %v650_v27 = vsel %vm648_vm3, %v633_v23, %v1628_v10 }
  0xae   : > { %v1633_v29 = vunpack.i.h.bf16 %v1631_v24  ;;  %v1632_v30 = vunpack.i.l.bf16 %v1631_v24  ;;  %v1623_v31 = vunpack.i.h.bf16 %v1621_v25  ;;  %v1622_v32 = vunpack.i.l.bf16 %v1621_v25 }
  0xaf   : > { %v1306_v34 = vpack.c.bf16 %v650_v27, %v649_v26 }
  0xb0   : > { %v635_v13 = vsel %vm631_vm2, %v1894_v16, %v1623_v31  ;;  %v634_v14 = vsel %vm631_vm2, %v1892_v15, %v1622_v32 }
  0xb1   : > { %1441 = vmatprep.mubr.msk.bf16.mxu0 %vm2071_vm5, %v1306_v34  ;;  %v1641_v35 = vpop.permute.xlu1 %1640  ;;  %v1636_v36 = vpop.permute.xlu0 %1635  ;;  %v651_v38 = vsel %vm648_vm3, %v634_v14, %v1632_v30  ;;  %v652_v39 = vsel %vm648_vm3, %v635_v13, %v1633_v29 }
  0xb2   : > { %v1643_v42 = vunpack.i.h.bf16 %v1641_v35  ;;  %v1642_v43 = vunpack.i.l.bf16 %v1641_v35  ;;  %v1638_v45 = vunpack.i.h.bf16 %v1636_v36  ;;  %v1637_v46 = vunpack.i.l.bf16 %v1636_v36 }
  0xb3   : > { %v1309_v47 = vpack.c.bf16 %v652_v39, %v651_v38 }
  0xb4   : > { %v643_v52 = vsel %vm631_vm2, %v1901_v20, %v1643_v42  ;;  %v642_v53 = vsel %vm631_vm2, %v1899_v19, %v1642_v43  ;;  %v640_v54 = vsel %vm631_vm2, %v1903_v21, %v1637_v46  ;;  %v641_v55 = vsel %vm631_vm2, %v1938_v44, %v1638_v45 }
  0xb5   : > { %1442 = vmatmul.mubr.msk.bf16.vlgmr.msra.gmra.mrb[0].mxu0 %vm2071_vm5, %v1309_v47  ;;  %v1651_v16 = vpop.permute.xlu1 %1650  ;;  %v1646_v48 = vpop.permute.xlu0 %1645 }
  0xb6   : > { %v1653_v15 = vunpack.i.h.bf16 %v1651_v16  ;;  %v1652_v49 = vunpack.i.l.bf16 %v1651_v16  ;;  %v1648_v50 = vunpack.i.h.bf16 %v1646_v48  ;;  %v1647_v51 = vunpack.i.l.bf16 %v1646_v48 }
  0xb8   : > { %v659_v56 = vsel %vm648_vm3, %v642_v53, %v1652_v49  ;;  %v660_v57 = vsel %vm648_vm3, %v643_v52, %v1653_v15  ;;  %v657_v58 = vsel %vm648_vm3, %v640_v54, %v1647_v51  ;;  %v658_v59 = vsel %vm648_vm3, %v641_v55, %v1648_v50 }
  0xb9   : > { %v1321_v60 = vpack.c.bf16 %v660_v57, %v659_v56  ;;  %v1661_v61 = vpop.permute.xlu1 %1660  ;;  %v1656_v20 = vpop.permute.xlu0 %1655  ;;  %v1318_v62 = vpack.c.bf16 %v658_v59, %v657_v58 }
  0xba   : > { %v1663_v0 = vunpack.i.h.bf16 %v1661_v61  ;;  %v1662_v19 = vunpack.i.l.bf16 %v1661_v61  ;;  %v1658_v1 = vunpack.i.h.bf16 %v1656_v20  ;;  %v1657_v2 = vunpack.i.l.bf16 %v1656_v20 }
  0xbb   : > { %1449 = vmatprep.mubr.msk.bf16.mxu1 %vm2071_vm5, %v1318_v62 }
  0xbc   : > { %1450 = vmatmul.mubr.msk.bf16.vlgmr.msra.gmra.mrb[0].mxu1 %vm2071_vm5, %v1321_v60  ;;  %v639_v10 = vsel %vm631_vm2, %v1974_v3, %v1663_v0  ;;  %v638_v11 = vsel %vm631_vm2, %v1968_v63, %v1662_v19  ;;  %v637_v12 = vsel %vm631_vm2, %v1982_v8, %v1658_v1  ;;  %v636_v17 = vsel %vm631_vm2, %v1980_v7, %v1657_v2 }
  0xbd   : > { %v1671_v21 = vpop.permute.xlu1 %1670  ;;  %v1666_v44 = vpop.permute.xlu0 %1665 }
  0xbe   : > { %v1673_v4 = vunpack.i.h.bf16 %v1671_v21  ;;  %v1672_v5 = vunpack.i.l.bf16 %v1671_v21  ;;  %v1668_v6 = vunpack.i.h.bf16 %v1666_v44  ;;  %v1667_v9 = vunpack.i.l.bf16 %v1666_v44 }
  0xc0   : > { %v655_v22 = vsel %vm648_vm3, %v638_v11, %v1672_v5  ;;  %v656_v23 = vsel %vm648_vm3, %v639_v10, %v1673_v4  ;;  %v653_v24 = vsel %vm648_vm3, %v636_v17, %v1667_v9  ;;  %v654_v25 = vsel %vm648_vm3, %v637_v12, %v1668_v6 }
  0xc1   : > { %v1315_v26 = vpack.c.bf16 %v656_v23, %v655_v22  ;;  %v1312_v27 = vpack.c.bf16 %v654_v25, %v653_v24  ;;  %v1681_v3 = vpop.permute.xlu1 %1680  ;;  %v1676_v29 = vpop.permute.xlu0 %1675 }
  0xc2   : > { %v1683_v30 = vunpack.i.h.bf16 %v1681_v3  ;;  %v1682_v63 = vunpack.i.l.bf16 %v1681_v3  ;;  %v1678_v31 = vunpack.i.h.bf16 %v1676_v29  ;;  %v1677_v32 = vunpack.i.l.bf16 %v1676_v29 }
  0xc3   : > { %1445 = vmatprep.mubr.msk.bf16.mxu0 %vm2071_vm5, %v1312_v27 }
  0xc4   : > { %1446 = vmatmul.mubr.msk.bf16.gmra.mrb[4].mxu0 %vm2071_vm5, %v1315_v26  ;;  %v647_v36 = vsel %vm631_vm2, %v2012_v37, %v1683_v30  ;;  %v646_v38 = vsel %vm631_vm2, %v1998_v28, %v1682_v63  ;;  %v645_v39 = vsel %vm631_vm2, %v2022_v41, %v1678_v31  ;;  %v644_v42 = vsel %vm631_vm2, %v2020_v40, %v1677_v32  ;;  %v2138_v41 = vld [vmem:[%s2299_s2] ss:$0 sm:$0xff] }
  0xc5   : > { %v1691_v7 = vpop.permute.xlu1 %1690  ;;  %v1686_v8 = vpop.permute.xlu0 %1685  ;;  %v890_v28 = vadd.s32 8, %v1897_v18  ;;  %v894_v37 = vstv %s893_s21 }
  0xc6   : > { %v1693_v34 = vunpack.i.h.bf16 %v1691_v7  ;;  %v1692_v13 = vunpack.i.l.bf16 %v1691_v7  ;;  %v1688_v14 = vunpack.i.h.bf16 %v1686_v8  ;;  %v1687_v35 = vunpack.i.l.bf16 %v1686_v8 }
  0xc7   : > { %v896_v40 = vadd.s32 %v894_v37, %v890_v28  ;;  %v2141_v49 = vadd.s32 %v894_v37, %v1897_v18  ;;  %vm892_vm6 = vcmp.lt.s32.totalorder %v890_v28, 14 }
  0xc8   : > { %v663_v43 = vsel %vm648_vm3, %v646_v38, %v1692_v13  ;;  %v664_v45 = vsel %vm648_vm3, %v647_v36, %v1693_v34  ;;  %v661_v46 = vsel %vm648_vm3, %v644_v42, %v1687_v35  ;;  %v662_v47 = vsel %vm648_vm3, %v645_v39, %v1688_v14 }
  0xc9   : > { %v1327_v16 = vpack.c.bf16 %v664_v45, %v663_v43  ;;  %v1324_v48 = vpack.c.bf16 %v662_v47, %v661_v46  ;;  %vm898_vm7 = vcmp.lt.s32.totalorder %v896_v40, 20  ;;  %vm897_vm8 = vcmp.lt.s32.totalorder %v2141_v49, 20 }
  0xca   : > { %vm2147_vm9 = vmand %vm892_vm6, %vm898_vm7 }
  0xcb   : > { %1453 = vmatprep.mubr.msk.bf16.mxu1 %vm2071_vm5, %v1324_v48 }
  0xcc   : > { %1454 = vmatmul.mubr.msk.bf16.gmra.mrb[4].mxu1 %vm2071_vm5, %v1327_v16 }
 0x188   : > { %v1443_v15 = vpop.f32.mrb[0].mxu0 }
 0x189   : > { %v860_v50 = vadd.f32 %v1443_v15, %v2138_v41  ;;  %v788_v51 = vpop.f32.mrb[1].mxu0 }
 0x18a   : > { %v858_v33 = vadd.f32 %v2138_v41, %v788_v51  ;;  %v1444_v52 = vpop.f32.mrb[2].mxu0 }
 0x18b   : > { %v876_v53 = vmax.f32 %v860_v50, 0.0  ;;  %v861_v54 = vadd.f32 %v1444_v52, %v2138_v41  ;;  %v791_v55 = vpop.f32.mrb[3].mxu0 }
 0x18c   : > { %v874_v56 = vmax.f32 %v858_v33, 0.0  ;;  %v859_v18 = vadd.f32 %v2138_v41, %v791_v55 }
 0x18d   : > { %v877_v58 = vmax.f32 %v861_v54, 0.0  ;;  %v903_v60 = vsel %vm897_vm8, %v876_v53, 0.0 }
 0x18e   : > { %v875_v59 = vmax.f32 %v859_v18, 0.0  ;;  %v901_v62 = vsel %vm897_vm8, %v874_v56, 0.0 }
 0x18f   : > { %v904_v61 = vsel %vm2147_vm9, %v877_v58, 0.0  ;;  %v1451_v20 = vpop.f32.mrb[0].mxu1 }
 0x190   : > { %v925_v0 = vmax.f32 %v903_v60, %v904_v61  ;;  %v902_v19 = vsel %vm2147_vm9, %v875_v59, 0.0  ;;  %v868_v1 = vadd.f32 %v1451_v20, %v2138_v41  ;;  %v820_v2 = vpop.f32.mrb[1].mxu1 }
 0x191   : > { %v918_v21 = vmax.f32 %v901_v62, %v902_v19  ;;  %v866_v44 = vadd.f32 %v2138_v41, %v820_v2  ;;  %v1452_v4 = vpop.f32.mrb[2].mxu1 }
 0x192   : > { %v926_v5 = vrot.slane %v925_v0, 4  ;;  %v884_v6 = vmax.f32 %v868_v1, 0.0  ;;  %v869_v9 = vadd.f32 %v1452_v4, %v2138_v41  ;;  %v823_v10 = vpop.f32.mrb[3].mxu1 }
 0x193   : > { %v919_v11 = vrot.slane %v918_v21, 4  ;;  %v882_v12 = vmax.f32 %v866_v44, 0.0  ;;  %v867_v17 = vadd.f32 %v2138_v41, %v823_v10 }
 0x194   : > { %v927_v22 = vmax.f32 %v925_v0, %v926_v5  ;;  %v885_v23 = vmax.f32 %v869_v9, 0.0  ;;  %v911_v27 = vsel %vm897_vm8, %v884_v6, 0.0 }
 0x195   : > { %v920_v24 = vmax.f32 %v918_v21, %v919_v11  ;;  %v883_v25 = vmax.f32 %v867_v17, 0.0  ;;  %v909_v30 = vsel %vm897_vm8, %v882_v12, 0.0 }
 0x196   : > { %v928_v26 = vrot.slane %v927_v22, 2  ;;  %v912_v3 = vsel %vm2147_vm9, %v885_v23, 0.0 }
 0x197   : > { %v921_v29 = vrot.slane %v920_v24, 2  ;;  %v953_v63 = vmax.f32 %v911_v27, %v912_v3  ;;  %v910_v31 = vsel %vm2147_vm9, %v883_v25, 0.0  ;;  %v1447_v32 = vpop.f32.mrb[4].mxu0 }
 0x198   : > { %v929_v7 = vmax.f32 %v927_v22, %v928_v26  ;;  %v946_v8 = vmax.f32 %v909_v30, %v910_v31  ;;  %v864_v34 = vadd.f32 %v1447_v32, %v2138_v41  ;;  %v804_v13 = vpop.f32.mrb[5].mxu0 }
 0x199   : > { %v922_v14 = vmax.f32 %v920_v24, %v921_v29  ;;  %v954_v35 = vrot.slane %v953_v63, 4  ;;  %v862_v36 = vadd.f32 %v2138_v41, %v804_v13  ;;  %v1448_v38 = vpop.f32.mrb[6].mxu0 }
 0x19a   : > { %v930_v39 = vrot.slane %v929_v7, 1  ;;  %v947_v42 = vrot.slane %v946_v8, 4  ;;  %v880_v43 = vmax.f32 %v864_v34, 0.0  ;;  %v865_v45 = vadd.f32 %v1448_v38, %v2138_v41  ;;  %v807_v46 = vpop.f32.mrb[7].mxu0 }
 0x19b   : > { %v923_v47 = vrot.slane %v922_v14, 1  ;;  %v878_v16 = vmax.f32 %v862_v36, 0.0  ;;  %v863_v48 = vadd.f32 %v2138_v41, %v807_v46  ;;  %v955_v15 = vmax.f32 %v953_v63, %v954_v35 }
 0x19c   : > { %v931_v28 = vmax.f32 %v929_v7, %v930_v39  ;;  %v881_v37 = vmax.f32 %v865_v45, 0.0  ;;  %v948_v51 = vmax.f32 %v946_v8, %v947_v42  ;;  %v907_v33 = vsel %vm897_vm8, %v880_v43, 0.0 }
 0x19d   : > { %v924_v40 = vmax.f32 %v922_v14, %v923_v47  ;;  %v879_v50 = vmax.f32 %v863_v48, 0.0  ;;  %v905_v54 = vsel %vm897_vm8, %v878_v16, 0.0  ;;  %v956_v61 = vrot.slane %v955_v15, 2 }
 0x19e   : > { %v908_v52 = vsel %vm2147_vm9, %v881_v37, 0.0  ;;  %v949_v19 = vrot.slane %v948_v51, 2 }
 0x19f   : > { %v983_v53 = vsel %vm982_vm10, %v931_v28, %v924_v40  ;;  %v939_v55 = vmax.f32 %v907_v33, %v908_v52  ;;  %v906_v56 = vsel %vm2147_vm9, %v879_v50, 0.0  ;;  %v1455_v18 = vpop.f32.mrb[4].mxu1  ;;  %v957_v11 = vmax.f32 %v955_v15, %v956_v61  ;;  %v917_v15 = vld [vmem:[#allocation2] sm:$0xff]  ;;  %v1120_v61 = vld [vmem:[%s2302_s5 + $0x18] sm:$0xff] (!%p1330_p12) }
 0x1a0   : > { %v932_v58 = vmax.f32 %v905_v54, %v906_v56  ;;  %v872_v59 = vadd.f32 %v1455_v18, %v2138_v41  ;;  %v836_v60 = vpop.f32.mrb[5].mxu1  ;;  %v950_v22 = vmax.f32 %v948_v51, %v949_v19  ;;  %v1702_v52 = vld [vmem:[%s2300_s3] sm:$0xff] (!%p1330_p12)   ;;  %v1703_v54 = vld [vmem:[%s2300_s3 + $0x8] sm:$0xff] (!%p1330_p12)   ;;  %v1704_v56 = vld [vmem:[%s2300_s3 + $0x10] sm:$0xff] (!%p1330_p12)  }
 0x1a1   : > { %v940_v20 = vrot.slane %v939_v55, 4  ;;  %v870_v62 = vadd.f32 %v2138_v41, %v836_v60  ;;  %v1456_v0 = vpop.f32.mrb[6].mxu1  ;;  %v958_v34 = vrot.slane %v957_v11, 1  ;;  %v1117_v18 = vld [vmem:[%s2302_s5] sm:$0xff] (!%p1330_p12)  ;;  %v1119_v60 = vld [vmem:[%s2302_s5 + $0x10] sm:$0xff] (!%p1330_p12)  ;;  %v1122_v19 = vld [vmem:[%s2302_s5 + $0x28] sm:$0xff] (!%p1330_p12) }
 0x1a2   : > { %v933_v1 = vrot.slane %v932_v58, 4  ;;  %v888_v2 = vmax.f32 %v872_v59, 0.0  ;;  %v873_v21 = vadd.f32 %v1456_v0, %v2138_v41  ;;  %v839_v44 = vpop.f32.mrb[7].mxu1  ;;  %v951_v32 = vrot.slane %v950_v22, 1  ;;  %v1121_v0 = vld [vmem:[%s2302_s5 + $0x20] sm:$0xff] (!%p1330_p12) }
 0x1a3   : > { %v941_v4 = vmax.f32 %v939_v55, %v940_v20  ;;  %v886_v5 = vmax.f32 %v870_v62, 0.0  ;;  %v871_v6 = vadd.f32 %v2138_v41, %v839_v44  ;;  %v959_v42 = vmax.f32 %v957_v11, %v958_v34  ;;  %v1705_v20 = vld [vmem:[%s2300_s3 + $0x18] sm:$0xff] (!%p1330_p12)  }
 0x1a4   : > { %v934_v9 = vmax.f32 %v932_v58, %v933_v1  ;;  %v889_v10 = vmax.f32 %v873_v21, 0.0  ;;  %v915_v24 = vsel %vm897_vm8, %v888_v2, 0.0  ;;  %v952_v38 = vmax.f32 %v950_v22, %v951_v32  ;;  %v1118_v58 = vld [vmem:[%s2302_s5 + $0x8] sm:$0xff] (!%p1330_p12)  ;;  %v1706_v1 = vld [vmem:[%s2300_s3 + $0x20] sm:$0xff] (!%p1330_p12)   ;;  %v1123_v21 = vld [vmem:[%s2302_s5 + $0x30] sm:$0xff] (!%p1330_p12) }
 0x1a5   : > { %v942_v12 = vrot.slane %v941_v4, 2  ;;  %v887_v17 = vmax.f32 %v871_v6, 0.0  ;;  %v913_v27 = vsel %vm897_vm8, %v886_v5, 0.0  ;;  %v1771_v55 = vmov (!%p1330_p12), 0.0|0.0   ;;  %v1124_v44 = vld [vmem:[%s2302_s5 + $0x38] sm:$0xff] (!%p1330_p12)  ;;  %v1125_v6 = vld [vmem:[%s2302_s5 + $0x40] sm:$0xff] (!%p1330_p12) }
 0x1a6   : > { %v935_v23 = vrot.slane %v934_v9, 2  ;;  %v916_v25 = vsel %vm2147_vm9, %v889_v10, 0.0  ;;  %1512 = vmatprep.subr.bf16.mxu1 (!%p1330_p12), %v1771_v55  ;;  %v1513_v59 = vpack.c.bf16 (!%p1330_p12), %v1118_v58, %v1117_v18  ;;  %v1516_v62 = vpack.c.bf16 (!%p1330_p12), %v1120_v61, %v1119_v60  ;;  %v1708_v10 = vld [vmem:[%s2300_s3 + $0x30] sm:$0xff] (!%p1330_p12)   ;;  %v1709_v22 = vld [vmem:[%s2300_s3 + $0x38] sm:$0xff] (!%p1330_p12)  }
 0x1a7   : > { %v943_v26 = vmax.f32 %v941_v4, %v942_v12  ;;  %v967_v3 = vmax.f32 %v915_v24, %v916_v25  ;;  %v914_v41 = vsel %vm2147_vm9, %v887_v17, 0.0  ;;  %v1519_v2 = vpack.c.bf16 (!%p1330_p12), %v1122_v19, %v1121_v0  ;;  %v1707_v4 = vld [vmem:[%s2300_s3 + $0x28] sm:$0xff] (!%p1330_p12)   ;;  %v1127_v12 = vld [vmem:[%s2302_s5 + $0x50] sm:$0xff] (!%p1330_p12)  ;;  %v1128_v17 = vld [vmem:[%s2302_s5 + $0x58] sm:$0xff] (!%p1330_p12) }
 0x1a8   : > { %v936_v29 = vmax.f32 %v934_v9, %v935_v23  ;;  %v960_v30 = vmax.f32 %v913_v27, %v914_v41  ;;  %1514 = vmatpush3.bf16.msra.mxu1 (!%p1330_p12), %v1513_v59  ;;  %v1522_v5 = vpack.c.bf16 (!%p1330_p12), %v1124_v44, %v1123_v21  ;;  %v1126_v9 = vld [vmem:[%s2302_s5 + $0x48] sm:$0xff] (!%p1330_p12)  ;;  %v1528_v24 = vpack.c.bf16 (!%p1330_p12), %v1128_v17, %v1127_v12  ;;  %v1129_v25 = vld [vmem:[%s2302_s5 + $0x60] sm:$0xff] (!%p1330_p12)  ;;  %v1131_v41 = vld [vmem:[%s2302_s5 + $0x70] sm:$0xff] (!%p1330_p12) }
 0x1a9   : > { %v944_v63 = vrot.slane %v943_v26, 1  ;;  %v968_v31 = vrot.slane %v967_v3, 4  ;;  %1515 = vmatprep.subr.bf16.mxu1 (!%p1330_p12), %v1771_v55  ;;  %v1525_v11 = vpack.c.bf16 (!%p1330_p12), %v1126_v9, %v1125_v6 }
 0x1aa   : > { %v937_v7 = vrot.slane %v936_v29, 1  ;;  %v961_v8 = vrot.slane %v960_v30, 4 }
 0x1ab   : > { %v969_v13 = vmax.f32 %v967_v3, %v968_v31  ;;  %v945_v36 = vmax.f32 %v943_v26, %v944_v63  ;;  %v1130_v26 = vld [vmem:[%s2302_s5 + $0x68] sm:$0xff] (!%p1330_p12)  ;;  %v1331_v63 = vld [vmem:[%s2301_s4] ss:$0 sm:$0xff] (!%p1330_p12) }
 0x1ac   : > { %v938_v14 = vmax.f32 %v936_v29, %v937_v7  ;;  %v962_v35 = vmax.f32 %v960_v30, %v961_v8  ;;  %1517 = vmatpush3.bf16.msra.mxu1 (!%p1330_p12), %v1516_v62  ;;  %v1531_v3 = vpack.c.bf16 (!%p1330_p12), %v1130_v26, %v1129_v25  ;;  %v1132_v29 = vld [vmem:[%s2302_s5 + $0x78] sm:$0xff] (!%p1330_p12) }
 0x1ad   : > { %v970_v49 = vrot.slane %v969_v13, 2  ;;  %1518 = vmatprep.subr.bf16.mxu1 (!%p1330_p12), %v1771_v55  ;;  %v1534_v30 = vpack.c.bf16 (!%p1330_p12), %v1132_v29, %v1131_v41 }
 0x1ae   : > { %v985_v39 = vsel %vm984_vm11, %v938_v14, %v983_v53  ;;  %v963_v57 = vrot.slane %v962_v35, 2  ;;  %v1769_v53 = vmov (!%p1330_p12), 0.0   ;;  %v1340_v14 = vld [vmem:[%s2303_s6] ss:$0 sm:$0xff] (!%p1330_p12) }
 0x1af   : > { %v987_v43 = vsel %vm986_vm12, %v945_v36, %v985_v39  ;;  %v971_v45 = vmax.f32 %v969_v13, %v970_v49  ;;  %1457 = vmatprep.subr.bf16.mxu0 (!%p1330_p12), %v1769_v53  ;;  %1473 = vmatprep.mubr.msk.bf16.mxu0 (!%p1330_p12), %vm1770_vm1, %v1769_v53 }
 0x1b0   : > { %v964_v46 = vmax.f32 %v962_v35, %v963_v57  ;;  %v989_v47 = vsel %vm988_vm13, %v952_v38, %v987_v43  ;;  %1458 = vmatpush3.bf16.msra.mxu0 (!%p1330_p12), %v1702_v52  ;;  %1509 = vmatprep.mubr.msk.f32.mxu1 (!%p1330_p12), %vm1770_vm1, %v1769_v53 }
 0x1b1   : > { %v972_v16 = vrot.slane %v971_v45, 1  ;;  %v991_v48 = vsel %vm990_vm14, %v959_v42, %v989_v47  ;;  %1459 = vmatprep.subr.bf16.mxu0 (!%p1330_p12), %v1769_v53  ;;  %1520 = vmatpush3.bf16.msra.mxu1 (!%p1330_p12), %v1519_v2 }
 0x1b2   : > { %v965_v28 = vrot.slane %v964_v46, 1  ;;  %1521 = vmatprep.subr.bf16.mxu1 (!%p1330_p12), %v1771_v55 }
 0x1b3   : > { %v973_v40 = vmax.f32 %v971_v45, %v972_v16 }
 0x1b4   : > { %v966_v37 = vmax.f32 %v964_v46, %v965_v28  ;;  %1002 = sbr.rel (%p1330_p12) target bundleno = 894 (0x37e), region = 97  ;;  %1460 = vmatpush3.bf16.msra.mxu0 (!%p1330_p12), %v1703_v54 }
 0x1b5   : > { %1461 = vmatprep.subr.bf16.mxu0 (!%p1330_p12), %v1769_v53  ;;  %1523 = vmatpush3.bf16.msra.mxu1 (!%p1330_p12), %v1522_v5 }
 0x1b6   : > { %v993_v50 = vsel %vm992_vm15, %v966_v37, %v991_v48  ;;  %1524 = vmatprep.subr.bf16.mxu1 (!%p1330_p12), %v1771_v55 }
 0x1b7   : > { %v995_v51 = vsel %vm994_vm0, %v973_v40, %v993_v50 }
 0x1b8   : > { %v997_v33 = vmax.f32 %v917_v15, %v995_v51  ;;  %1462 = vmatpush3.bf16.msra.mxu0 (!%p1330_p12), %v1704_v56 }
 0x1b9   : > { %1463 = vmatprep.subr.bf16.mxu0 (!%p1330_p12), %v1769_v53  ;;  %1526 = vmatpush3.bf16.msra.mxu1 (!%p1330_p12), %v1525_v11 }
 0x1ba   : > { %998 = vst [vmem:[#allocation2] sm:$0xff] %v997_v33  ;;  %1527 = vmatprep.subr.bf16.mxu1 (!%p1330_p12), %v1771_v55 }
 0x1bc   : > { %1464 = vmatpush3.bf16.msra.mxu0 %v1705_v20 }
 0x1bd   : > { %1465 = vmatprep.subr.bf16.mxu0 %v1769_v53  ;;  %1529 = vmatpush3.bf16.msra.mxu1 %v1528_v24 }
 0x1be   : > { %1530 = vmatprep.subr.bf16.mxu1 %v1771_v55 }
 0x1c0   : > { %1466 = vmatpush3.bf16.msra.mxu0 %v1706_v1 }
 0x1c1   : > { %1467 = vmatprep.subr.bf16.mxu0 %v1769_v53  ;;  %v1003_v23 = vld [vmem:[#allocation2] sm:$0xff]  ;;  %1532 = vmatpush3.bf16.msra.mxu1 %v1531_v3 }
 0x1c2   : > { %v1004_v27 = vpack.c.bf16 %v1003_v23, %v1003_v23  ;;  %1533 = vmatprep.subr.bf16.mxu1 %v1771_v55 }
 0x1c4   : > { %1468 = vmatpush3.bf16.msra.mxu0 %v1707_v4 }
 0x1c5   : > { %1469 = vmatprep.subr.bf16.mxu0 %v1769_v53  ;;  %1535 = vmatpush3.bf16.msra.mxu1 %v1534_v30 }
 0x1c8   : > { %1470 = vmatpush3.bf16.msra.mxu0 %v1708_v10 }
 0x1c9   : > { %1471 = vmatprep.subr.bf16.mxu0 %v1769_v53 }
 0x1cc   : > { %1472 = vmatpush3.bf16.msra.mxu0 %v1709_v22 }
 0x1cf   : > { %1474 = vmatmul.mubr.bf16.vlgmr.msra.gmra.mrb[0].mxu0 %v1004_v27 }
 0x2a2   : > { %v1110_v31 = vpop.f32.mrb[0].mxu0 }
 0x2a3   : > { %v1111_v32 = vadd.f32 %v1331_v63, %v1110_v31  ;;  %v1475_v7 = vpop.f32.mrb[1].mxu0 }
 0x2a4   : > { %v1113_v8 = vpop.f32.mrb[2].mxu0 }
 0x2a5   : > { %v1116_v34 = vmax.f32 %v1111_v32, 0.0  ;;  %v1476_v13 = vpop.f32.mrb[3].mxu0 }
 0x2a7   : > { %1510 = vmatmul.mubr.f32.vlgmr.msra.gmra.mrb[0].mxu1 %v1116_v34 }
 0x37a   : > { %v1206_v35 = vpop.f32.mrb[0].mxu1 }
 0x37b   : > { %v1207_v36 = vadd.f32 %v1340_v14, %v1206_v35  ;;  %v1511_v49 = vpop.f32.mrb[1].mxu1 }
 0x37d   : > { %1210 = vst [vmem:[%s1880_s17] sm:$0xff] %v1207_v36 }
 0x37e PF: > { %s17_s30 = sadd.s32 1, %s1764_s30   ;;  %s2309_s24 = smov %s1744_s25 }
 0x37f   : > { %p14_p13 = scmp.ge.s32.totalorder %s17_s30, 6   ;;  %s2310_s25 = smov %s1863_s14 }
 0x380   : > { %s2311_s26 = smov %s1756_s28  ;;  %s2312_s27 = smov %s1760_s29 }
 0x381   : > { %s2313_s28 = smov %s2316_s8  ;;  %s2314_s29 = smov %s2320_s9 }
 0x382   :  { %16 = sbr.rel (!%p14_p13) target bundleno = 4 (0x4), region = 132 }

</bundles_post_ra>
